<compile_context>
chip_gen: v6e
topology: v6e:2x2x1
jax: 0.10.0
libtpu: 0.0.40
codegen_flags: <defaults>
</compile_context>

<pallas_src>
import functools
import math

import jax
import jax.numpy as jnp
from jax import lax
from jax.experimental import pallas as pl
from jax.experimental.pallas import tpu as pltpu

OUT_PAD = 128  # lane-dense padded width of the final 6-channel output projection


# ----------------------------------------------------------------------------- small math helpers
def _round_up(x, m):
    return ((x + m - 1) // m) * m


def _layernorm(v, eps=1e-6):
    # DiT uses LayerNorm(eps=1e-6, elementwise_affine=False)
    mu = jnp.mean(v, axis=-1, keepdims=True)
    var = jnp.mean((v - mu) ** 2, axis=-1, keepdims=True)
    return (v - mu) * lax.rsqrt(var + eps)


def _gelu_tanh(x):
    # DiT MLP uses GELU(approximate="tanh")
    return 0.5 * x * (1.0 + jnp.tanh(0.7978845608028654 * (x + 0.044715 * x * x * x)))


# ----------------------------------------------------------------------------- noise kernels
def _noise_kernel(x_ref, eps_ref, sa_ref, sb_ref, out_ref):
    # x_noise = sqrt(alpha_bar) * x + sqrt(1 - alpha_bar) * eps   (per-batch coeffs)
    out_ref[...] = sa_ref[...] * x_ref[...] + sb_ref[...] * eps_ref[...]


def _noise_mask_kernel(x_ref, eps_ref, sa_ref, sb_ref, m_ref, out_ref):
    xn = sa_ref[...] * x_ref[...] + sb_ref[...] * eps_ref[...]
    out_ref[...] = xn * m_ref[...] + x_ref[...] * (1.0 - m_ref[...])


def _full_spec(shape):
    """BlockSpec whose block is the whole array (block dims == array dims)."""
    ndim = len(shape)
    return pl.BlockSpec(shape, lambda *_: (0,) * ndim)


def _pallas_full(kernel, out_shape, *args):
    return pl.pallas_call(
        kernel,
        out_shape=out_shape,
        grid=(1,),
        in_specs=[_full_spec(a.shape) for a in args],
        out_specs=_full_spec(out_shape.shape),
    )(*args)


# ----------------------------------------------------------------------------- fused DiT stack kernel
def _dit_stack_kernel(
    tok_ref, temb_ref, pos_ref, we_ref, be_ref,
    wt1_ref, bt1_ref, wt2_ref, bt2_ref,
    wada_ref, bada_ref,
    wq_ref, bq_ref, wk_ref, bk_ref, wv_ref, bv_ref,
    wproj_ref, bproj_ref,
    wm1_ref, bm1_ref, wm2_ref, bm2_ref,
    wadaf_ref, badaf_ref, wout_ref, bout_ref,
    out_ref, xs_ref, cs_ref,
    *, num_heads, depth,
):
    d = pl.program_id(1)                 # depth (arbitrary axis); batch is program_id(0)
    T, D = xs_ref.shape
    H = num_heads
    hd = D // H

    # ---- prologue (layer 0 only): token embed + pos embed, timestep MLP -> c
    @pl.when(d == 0)
    def _prologue():
        xs_ref[...] = (
            jnp.dot(tok_ref[...], we_ref[...], preferred_element_type=jnp.float32)
            + be_ref[...] + pos_ref[...]
        )
        h0 = jnp.dot(temb_ref[...], wt1_ref[...],
                     preferred_element_type=jnp.float32) + bt1_ref[...]          # (1, D)
        cs_ref[...] = jnp.dot(jax.nn.silu(h0), wt2_ref[...],
                              preferred_element_type=jnp.float32) + bt2_ref[...]  # (1, D)

    x = xs_ref[...]                       # (T, D) resident token state
    c_act = jax.nn.silu(cs_ref[...])      # (1, D)  adaLN input (SiLU applied once)

    # ---- adaLN-Zero modulation: six (1,D)@(D,D) chunks as one batched matmul
    c6 = jnp.broadcast_to(c_act[None], (6, 1, D))
    mod = jnp.einsum("cod,cde->coe", c6, wada_ref[...],
                     preferred_element_type=jnp.float32) + bada_ref[...]          # (6, 1, D)
    shift_msa, scale_msa, gate_msa = mod[0], mod[1], mod[2]
    shift_mlp, scale_mlp, gate_mlp = mod[3], mod[4], mod[5]

    # ---- multi-head self-attention branch (head axis = leading batch dim)
    h = _layernorm(x) * (1.0 + scale_msa) + shift_msa                             # (T, D)
    hb = jnp.broadcast_to(h[None], (H, T, D))                                     # (H, T, D)
    q = jnp.einsum("htd,hde->hte", hb, wq_ref[...],
                   preferred_element_type=jnp.float32) + bq_ref[...]              # (H, T, hd)
    k = jnp.einsum("htd,hde->hte", hb, wk_ref[...],
                   preferred_element_type=jnp.float32) + bk_ref[...]
    v = jnp.einsum("htd,hde->hte", hb, wv_ref[...],
                   preferred_element_type=jnp.float32) + bv_ref[...]
    q = q * (1.0 / math.sqrt(hd))                                                 # scale on q, not scores
    s = jnp.einsum("hqe,hke->hqk", q, k, preferred_element_type=jnp.float32)      # (H, T, T)
    s = s - jnp.max(s, axis=-1, keepdims=True)
    p = jnp.exp(s)
    p = p * pl.reciprocal(jnp.sum(p, axis=-1, keepdims=True), approx=True)
    o = jnp.einsum("hqk,hke->hqe", p, v, preferred_element_type=jnp.float32)      # (H, T, hd)
    # per-head projection (H,hd,D) then sum over heads == concat(heads) @ Wproj
    attn = jnp.sum(
        jnp.einsum("hqe,hed->hqd", o, wproj_ref[...],
                   preferred_element_type=jnp.float32),
        axis=0,
    ) + bproj_ref[...]                                                            # (T, D)
    x = x + gate_msa * attn

    # ---- MLP branch
    h = _layernorm(x) * (1.0 + scale_mlp) + shift_mlp
    m = jnp.dot(h, wm1_ref[...], preferred_element_type=jnp.float32) + bm1_ref[...]
    m = _gelu_tanh(m)
    m = jnp.dot(m, wm2_ref[...], preferred_element_type=jnp.float32) + bm2_ref[...]
    x = x + gate_mlp * m
    xs_ref[...] = x

    # ---- DiT final layer, fused at the last depth step (lane-dense 128-wide output)
    @pl.when(d == depth - 1)
    def _final():
        c2 = jnp.broadcast_to(c_act[None], (2, 1, D))
        modf = jnp.einsum("cod,cde->coe", c2, wadaf_ref[...],
                          preferred_element_type=jnp.float32) + badaf_ref[...]    # (2, 1, D)
        hf = _layernorm(x) * (1.0 + modf[1]) + modf[0]
        out_ref[...] = (
            jnp.dot(hf, wout_ref[...], preferred_element_type=jnp.float32) + bout_ref[...]
        )


# ----------------------------------------------------------------------------- spec builders
def _const_spec(shape):
    nd = len(shape)
    return pl.BlockSpec(tuple(shape), lambda b, d: (0,) * nd)


def _batch_spec(shape):
    nd = len(shape)
    return pl.BlockSpec((None,) + tuple(shape[1:]), lambda b, d: (b,) + (0,) * (nd - 1))


def _layer_spec(shape):
    nd = len(shape)
    return pl.BlockSpec((None,) + tuple(shape[1:]), lambda b, d: (d,) + (0,) * (nd - 1))


# ----------------------------------------------------------------------------- embeddings (JAX glue)
def _timestep_embedding(t, dim, max_period=10000.0):
    half = dim // 2
    freqs = jnp.exp(-math.log(max_period) * jnp.arange(half, dtype=jnp.float32) / half)
    args = t.astype(jnp.float32)[:, None] * freqs[None, :]
    return jnp.concatenate([jnp.cos(args), jnp.sin(args)], axis=-1)


def _sincos_pos_embed(T, dim):
    pos = jnp.arange(T, dtype=jnp.float32)[:, None]
    half = dim // 2
    omega = jnp.exp(-math.log(10000.0) * jnp.arange(half, dtype=jnp.float32) / half)
    args = pos * omega[None, :]
    return jnp.concatenate([jnp.sin(args), jnp.cos(args)], axis=-1)


# ----------------------------------------------------------------------------- model
class RayDiffuserPallas:
    def __init__(self, key, *, depth=2, width=8, height=4, hidden_size=64, num_heads=4,
                 feature_dim=16, max_num_images=1, append_ndc=True, freq_dim=256,
                 num_timesteps=100):
        self.ray_dim = 6
        self.append_ndc = append_ndc
        self.width = width
        self.height = height
        self.max_num_images = max_num_images
        self.feature_dim = feature_dim
        self.hidden = hidden_size
        self.num_heads = num_heads
        self.depth = depth
        self.freq_dim = freq_dim
        self.input_dim = self.ray_dim + feature_dim + (2 if append_ndc else 0)
        self.input_pad = _round_up(self.input_dim, 32)   # pad MXU contraction dim

        # NoiseScheduler (synthetic linear-beta DDPM schedule, deterministic)
        betas = jnp.linspace(1e-4, 0.02, num_timesteps, dtype=jnp.float32)
        self.alphas_cumprod = jnp.cumprod(1.0 - betas)

        D = hidden_size
        Hh = num_heads
        hd = D // Hh
        L = depth

        def w(k, shape, scale=0.02):
            return scale * jax.random.normal(k, shape, jnp.float32)

        keys = iter(jax.random.split(key, 16))

        # token / patch embedding (rows beyond input_dim are zero -> padded channels inert)
        w_emb = w(next(keys), (self.input_dim, D))
        self.w_embed = jnp.zeros((self.input_pad, D), jnp.float32).at[: self.input_dim].set(w_emb)
        self.b_embed = jnp.zeros((1, D), jnp.float32)

        # timestep MLP: Linear(freq,D) -> SiLU -> Linear(D,D)
        self.w_t1 = w(next(keys), (freq_dim, D))
        self.b_t1 = jnp.zeros((1, D), jnp.float32)
        self.w_t2 = w(next(keys), (D, D))
        self.b_t2 = jnp.zeros((1, D), jnp.float32)

        # positional embedding (synthetic stand-in, see TODO at top)
        self.pos_embed = _sincos_pos_embed(max_num_images * height * width, D)

        # per-layer stacked weights (leading depth axis, selected by index_map)
        self.w_ada = w(next(keys), (L, 6, D, D))          # adaLN chunks leading -> free indexing
        self.b_ada = jnp.zeros((L, 6, 1, D), jnp.float32)
        self.w_q = w(next(keys), (L, Hh, D, hd))          # per-head QKV/proj -> batched matmuls
        self.b_q = jnp.zeros((L, Hh, 1, hd), jnp.float32)
        self.w_k = w(next(keys), (L, Hh, D, hd))
        self.b_k = jnp.zeros((L, Hh, 1, hd), jnp.float32)
        self.w_v = w(next(keys), (L, Hh, D, hd))
        self.b_v = jnp.zeros((L, Hh, 1, hd), jnp.float32)
        self.w_proj = w(next(keys), (L, Hh, hd, D))
        self.b_proj = jnp.zeros((L, 1, D), jnp.float32)
        self.w_mlp1 = w(next(keys), (L, D, 4 * D))
        self.b_mlp1 = jnp.zeros((L, 1, 4 * D), jnp.float32)
        self.w_mlp2 = w(next(keys), (L, 4 * D, D))
        self.b_mlp2 = jnp.zeros((L, 1, D), jnp.float32)

        # DiT final layer (output projection padded to OUT_PAD lanes, real cols = ray_dim)
        self.w_ada_f = w(next(keys), (2, D, D))
        self.b_ada_f = jnp.zeros((2, 1, D), jnp.float32)
        w_out = w(next(keys), (D, self.ray_dim))
        self.w_out = jnp.zeros((D, OUT_PAD), jnp.float32).at[:, : self.ray_dim].set(w_out)
        self.b_out = jnp.zeros((1, OUT_PAD), jnp.float32)

    # ---- forward noise (fused elementwise kernel, optional mask blend)
    def forward_noise(self, x, t, epsilon=None, mask=None, key=None):
        if epsilon is None:
            epsilon = jax.random.normal(key, x.shape, x.dtype)
        else:
            epsilon = epsilon.reshape(x.shape)
        alpha_bar = self.alphas_cumprod[t.reshape(-1)]
        B = x.shape[0]
        R = math.prod(x.shape[1:])
        sa = jnp.sqrt(alpha_bar).reshape(B, 1).astype(jnp.float32)
        sb = jnp.sqrt(1.0 - alpha_bar).reshape(B, 1).astype(jnp.float32)
        xf = x.reshape(B, R).astype(jnp.float32)
        ef = epsilon.reshape(B, R).astype(jnp.float32)
        out_sds = jax.ShapeDtypeStruct((B, R), jnp.float32)
        if mask is None:
            out = _pallas_full(_noise_kernel, out_sds, xf, ef, sa, sb)
        else:
            mf = jnp.broadcast_to(mask, x.shape).reshape(B, R).astype(jnp.float32)
            out = _pallas_full(_noise_mask_kernel, out_sds, xf, ef, sa, sb, mf)
        return out.reshape(x.shape), epsilon

    # ---- fused DiT predictor: one pallas_call, grid=(B, depth)
    def _predict(self, tokens, temb):
        B, T, Cp = tokens.shape
        D = self.hidden

        arrays_and_specs = [
            (tokens,        _batch_spec(tokens.shape)),
            (temb,          _batch_spec(temb.shape)),
            (self.pos_embed, _const_spec(self.pos_embed.shape)),
            (self.w_embed,  _const_spec(self.w_embed.shape)),
            (self.b_embed,  _const_spec(self.b_embed.shape)),
            (self.w_t1,     _const_spec(self.w_t1.shape)),
            (self.b_t1,     _const_spec(self.b_t1.shape)),
            (self.w_t2,     _const_spec(self.w_t2.shape)),
            (self.b_t2,     _const_spec(self.b_t2.shape)),
            (self.w_ada,    _layer_spec(self.w_ada.shape)),
            (self.b_ada,    _layer_spec(self.b_ada.shape)),
            (self.w_q,      _layer_spec(self.w_q.shape)),
            (self.b_q,      _layer_spec(self.b_q.shape)),
            (self.w_k,      _layer_spec(self.w_k.shape)),
            (self.b_k,      _layer_spec(self.b_k.shape)),
            (self.w_v,      _layer_spec(self.w_v.shape)),
            (self.b_v,      _layer_spec(self.b_v.shape)),
            (self.w_proj,   _layer_spec(self.w_proj.shape)),
            (self.b_proj,   _layer_spec(self.b_proj.shape)),
            (self.w_mlp1,   _layer_spec(self.w_mlp1.shape)),
            (self.b_mlp1,   _layer_spec(self.b_mlp1.shape)),
            (self.w_mlp2,   _layer_spec(self.w_mlp2.shape)),
            (self.b_mlp2,   _layer_spec(self.b_mlp2.shape)),
            (self.w_ada_f,  _const_spec(self.w_ada_f.shape)),
            (self.b_ada_f,  _const_spec(self.b_ada_f.shape)),
            (self.w_out,    _const_spec(self.w_out.shape)),
            (self.b_out,    _const_spec(self.b_out.shape)),
        ]
        args = [a for a, _ in arrays_and_specs]
        in_specs = [s for _, s in arrays_and_specs]

        kernel = functools.partial(_dit_stack_kernel,
                                   num_heads=self.num_heads, depth=self.depth)
        return pl.pallas_call(
            kernel,
            out_shape=jax.ShapeDtypeStruct((B, T, OUT_PAD), jnp.float32),
            grid=(B, self.depth),
            in_specs=in_specs,
            out_specs=pl.BlockSpec((None, T, OUT_PAD), lambda b, d: (b, 0, 0)),
            scratch_shapes=[
                pltpu.VMEM((T, D), jnp.float32),   # resident token state across depth
                pltpu.VMEM((1, D), jnp.float32),   # conditioning vector c
            ],
            compiler_params=pltpu.CompilerParams(
                dimension_semantics=("parallel", "arbitrary")),
        )(*args)

    # ---- DiT ray predictor (wrapper: layout glue + fused kernel)
    def ray_predictor(self, scene, t):
        B, N, C, H, W = scene.shape
        T = N * H * W
        tokens = jnp.transpose(scene, (0, 1, 3, 4, 2)).reshape(B, T, C)   # channel-last tokens
        tokens = jnp.pad(tokens, ((0, 0), (0, 0), (0, self.input_pad - C)))
        temb = _timestep_embedding(t, self.freq_dim).reshape(B, 1, self.freq_dim)

        y = self._predict(tokens, temb)                                   # (B, T, OUT_PAD)
        y = y[:, :, : self.ray_dim].reshape(B, N, H, W, self.ray_dim)
        return jnp.transpose(y, (0, 1, 4, 2, 3))                          # (B, N, 6, H, W)

    # ---- full forward
    def forward(self, features=None, rays=None, rays_noisy=None, t=None, mask=None,
                ndc_coordinates=None, epsilon=None, compute_x0=False, noise_key=None):
        B = features.shape[0]
        if isinstance(t, int):
            t = jnp.full((1,), t, dtype=jnp.int32)
        t = jnp.asarray(t, jnp.int32).reshape(-1)
        t = jnp.broadcast_to(t, (B,))
        if rays_noisy is None:
            rays_noisy, epsilon = self.forward_noise(rays, t, epsilon=epsilon,
                                                     mask=mask, key=noise_key)
        else:
            epsilon = None
        scene_features = jnp.concatenate([features, rays_noisy], axis=2)
        if self.append_ndc:
            scene_features = jnp.concatenate([scene_features, ndc_coordinates], axis=2)
        epsilon_pred = self.ray_predictor(scene_features, t)
        if compute_x0:
            a = self.alphas_cumprod[t].reshape(-1, 1, 1, 1, 1)
            x0 = (rays_noisy - jnp.sqrt(1.0 - a) * epsilon_pred) / jnp.sqrt(a)
            return epsilon_pred, x0
        return epsilon_pred, epsilon


# ----------------------------------------------------------------------------- main
if __name__ == "__main__":
    key = jax.random.PRNGKey(0)
    k_params, k_feat, k_rays, k_eps = jax.random.split(key, 4)

    B, N, H, W = 2, 1, 4, 8            # small shapes (height=4 patches, width=8 patches)
    FEAT, HID, DEPTH, HEADS = 16, 64, 2, 4

    model = RayDiffuserPallas(k_params, depth=DEPTH, width=W, height=H,
                              hidden_size=HID, num_heads=HEADS, feature_dim=FEAT,
                              max_num_images=N, append_ndc=True)

    features = jax.random.normal(k_feat, (B, N, FEAT, H, W), jnp.float32)
    rays = jax.random.normal(k_rays, (B, N, 6, H, W), jnp.float32)
    epsilon = jax.random.normal(k_eps, (B, N, 6, H, W), jnp.float32)

    ys = jnp.linspace(-1.0, 1.0, H)
    xs = jnp.linspace(-1.0, 1.0, W)
    gy, gx = jnp.meshgrid(ys, xs, indexing="ij")
    ndc = jnp.broadcast_to(jnp.stack([gx, gy])[None, None],
                           (B, N, 2, H, W)).astype(jnp.float32)

    t = jnp.array([3, 57], dtype=jnp.int32)

    eps_pred, eps_used = model.forward(features=features, rays=rays, t=t,
                                       ndc_coordinates=ndc, epsilon=epsilon)
    jax.block_until_ready(eps_pred)
    assert eps_pred.shape == (B, N, 6, H, W)
    assert eps_pred.dtype == jnp.float32
    assert bool(jnp.all(jnp.isfinite(eps_pred)))
    print("KERNEL_OK")
</pallas_src>

<mosaic_0001>
module attributes {stable_mosaic.version = 11 : i64} {
  func.func @_noise_kernel(%arg0: i32, %arg1: memref<2x192xf32, #tpu.memory_space<vmem>>, %arg2: memref<2x192xf32, #tpu.memory_space<vmem>>, %arg3: memref<2x1xf32, #tpu.memory_space<vmem>>, %arg4: memref<2x1xf32, #tpu.memory_space<vmem>>, %arg5: memref<2x192xf32, #tpu.memory_space<vmem>>) attributes {dimension_semantics = [#tpu.dimension_semantics<arbitrary>], iteration_bounds = array<i64: 1>, scalar_prefetch = 0 : i64, scratch_operands = 0 : i64, tpu.core_type = #tpu.core_type<tc>, window_params = [{pipeline_mode = #tpu.pipeline_mode<synchronous>, transform_indices = @transform_0, window_bounds = array<i64: 2, 192>}, {pipeline_mode = #tpu.pipeline_mode<synchronous>, transform_indices = @transform_1, window_bounds = array<i64: 2, 192>}, {pipeline_mode = #tpu.pipeline_mode<synchronous>, transform_indices = @transform_2, window_bounds = array<i64: 2, 1>}, {pipeline_mode = #tpu.pipeline_mode<synchronous>, transform_indices = @transform_3, window_bounds = array<i64: 2, 1>}, {pipeline_mode = #tpu.pipeline_mode<synchronous>, transform_indices = @transform_4, window_bounds = array<i64: 2, 192>}]} {
    %c0 = arith.constant 0 : index
    %c0_0 = arith.constant 0 : index
    %0 = vector.load %arg3[%c0, %c0_0] : memref<2x1xf32, #tpu.memory_space<vmem>>, vector<2x1xf32>
    %c0_1 = arith.constant 0 : index
    %c0_2 = arith.constant 0 : index
    %1 = vector.load %arg1[%c0_1, %c0_2] : memref<2x192xf32, #tpu.memory_space<vmem>>, vector<2x192xf32>
    %2 = vector.broadcast %0 : vector<2x1xf32> to vector<2x192xf32>
    %3 = arith.mulf %2, %1 : vector<2x192xf32>
    %c0_3 = arith.constant 0 : index
    %c0_4 = arith.constant 0 : index
    %4 = vector.load %arg4[%c0_3, %c0_4] : memref<2x1xf32, #tpu.memory_space<vmem>>, vector<2x1xf32>
    %c0_5 = arith.constant 0 : index
    %c0_6 = arith.constant 0 : index
    %5 = vector.load %arg2[%c0_5, %c0_6] : memref<2x192xf32, #tpu.memory_space<vmem>>, vector<2x192xf32>
    %6 = vector.broadcast %4 : vector<2x1xf32> to vector<2x192xf32>
    %7 = arith.mulf %6, %5 : vector<2x192xf32>
    %8 = arith.addf %3, %7 : vector<2x192xf32>
    %c0_7 = arith.constant 0 : index
    %c0_8 = arith.constant 0 : index
    %9 = vector.load %arg5[%c0_7, %c0_8] : memref<2x192xf32, #tpu.memory_space<vmem>>, vector<2x192xf32>
    tpu.vector_store %arg5[%c0_7, %c0_8], %8 {strides = array<i32>} : memref<2x192xf32, #tpu.memory_space<vmem>>, vector<2x192xf32>,
    return
  }
  func.func @transform_0(%arg0: i32) -> (i32, i32) {
    %c0_i32 = arith.constant 0 : i32
    %c0_i32_0 = arith.constant 0 : i32
    %c0_i32_1 = arith.constant 0 : i32
    return %c0_i32, %c0_i32_0 : i32, i32
  }
  func.func @transform_1(%arg0: i32) -> (i32, i32) {
    %c0_i32 = arith.constant 0 : i32
    %c0_i32_0 = arith.constant 0 : i32
    %c0_i32_1 = arith.constant 0 : i32
    return %c0_i32, %c0_i32_0 : i32, i32
  }
  func.func @transform_2(%arg0: i32) -> (i32, i32) {
    %c0_i32 = arith.constant 0 : i32
    %c0_i32_0 = arith.constant 0 : i32
    %c0_i32_1 = arith.constant 0 : i32
    return %c0_i32, %c0_i32_0 : i32, i32
  }
  func.func @transform_3(%arg0: i32) -> (i32, i32) {
    %c0_i32 = arith.constant 0 : i32
    %c0_i32_0 = arith.constant 0 : i32
    %c0_i32_1 = arith.constant 0 : i32
    return %c0_i32, %c0_i32_0 : i32, i32
  }
  func.func @transform_4(%arg0: i32) -> (i32, i32) {
    %c0_i32 = arith.constant 0 : i32
    %c0_i32_0 = arith.constant 0 : i32
    %c0_i32_1 = arith.constant 0 : i32
    return %c0_i32, %c0_i32_0 : i32, i32
  }
}

</mosaic_0001>

<bundles_post_ra>
// kernel: tpu_custom_call.1
= control target key start
LH: loop header
LB: loop body
LE: loop exit
PB: predicated region body
PF: predicated region fallthrough
CT: control target
= control target key end

     0   :  { %9 = vsyncpa [#allocation3], 0  ;;  %s197_s0 = inlined_call_operand.vmem [shape: f32[2,192], index: 0, kind: input, shape index: {}]   ;;  %s198_s1 = inlined_call_operand.hbm [shape: f32[2,192], index: 1, kind: input, shape index: {}]   ;;  %s199_s2 = inlined_call_operand.vmem [shape: f32[2,1], index: 2, kind: input, shape index: {}]   ;;  %s200_s3 = inlined_call_operand.vmem [shape: f32[2,1], index: 3, kind: input, shape index: {}]   ;;  %s201_s4 = inlined_call_operand.hbm [shape: f32[2,192], index: 4, kind: output, shape index: {}]  }
   0x1   :  { %10 = vsyncpa [#allocation4], 0  ;;  %s153_s15 = smov [#allocation2]  }
   0x2   :  { %s19_s16 = sshll.u32 %s153_s15, 4  ;;  %s20_s16 = int_to_ptr.vmem [resolvable:$true] %s19_s16 }
   0x3   :  { %s117_s17 = scalar_lea.vmem %s20_s16, 64  ;;  %p122_p1 = scmp.lt.s32.totalorder %s20_s16, %s20_s16 }
   0x4   :  { %p118_p0 = scmp.ne.s32.totalorder %s20_s16, %s117_s17  ;;  %p123_p2 = scmp.lt.s32.totalorder %s117_s17, %s117_s17 }
   0x6   :  { %p124_p3 = por %p123_p2, %p122_p1 }
   0x8   :  { %p125_p4 = pnand %p124_p3, %p118_p0 }
   0xa   :  { %128 = shalt.err (!%p125_p4)
}
   0xb   :  { %22 = dma.hbm_to_vmem [thread:$0]  %s198_s1, 64, %s20_s16, [#allocation3]  }
   0xc   :  { %149 = dma.done.wait [#allocation3], 64  }
   0xd   :  { %150 = vsyncadd [#allocation3], 4294967232  ;;  %v154_v0 = vmov 0   ;;  %v30_v1 = vld [vmem:[%s199_s2] sm:$0x3]  ;;  %v78_v7 = vlaneseq  ;;  %vm83_vm0 = vcmask 1041408  }
   0xe   :  { %108 = vset.pattern.permute.xlu0 %v154_v0  ;;  %v50_v2 = vld [vmem:[%s200_s3] sm:$0x3]  ;;  %v155_v5 = vmov 1983009808   ;;  %vm84_vm1 = vcmask 519170  }
   0xf   :  { %34 = vperm.xlu0 %108, %v30_v1   ;;  %v102_v3 = vld.sshfl [vmem:[%s197_s0] sm:$0x33 pattern:$0x76325410]  ;;  %v76_v6 = vunpack.c.l.s4 %v155_v5  ;;  %v79_v12 = vshrl.u32 %v78_v7, 7  ;;  %s156_s0 = smov [#allocation5]   ;;  %vm85_vm2 = vmor %vm84_vm1, %vm83_vm0 }
  0x10   :  { %v103_v4 = vld.sshfl [vmem:[#allocation2] sm:$0x33 pattern:$0x76325410]  ;;  %v45_v9 = vcombine.high %v102_v3, %v102_v3  ;;  %s93_s1 = sshll.u32 %s156_s0, 4  ;;  %s94_s1 = int_to_ptr.vmem [resolvable:$true] %s93_s1 }
  0x11   :  { %v65_v10 = vcombine.high %v103_v4, %v103_v4  ;;  %v77_v11 = vunpack.c.0.s8 %v76_v6  ;;  %s129_s2 = scalar_lea.vmem %s94_s1, 64  ;;  %p134_p6 = scmp.lt.s32.totalorder %s94_s1, %s94_s1 }
  0x12   :  { %p130_p5 = scmp.ne.s32.totalorder %s94_s1, %s129_s2  ;;  %p135_p7 = scmp.lt.s32.totalorder %s129_s2, %s129_s2 }
  0x13   :  { %54 = vperm.xlu0 %108, %v50_v2   ;;  %v80_v18 = vsub.s32 %v77_v11, %v79_v12 }
  0x14   :  { %p136_p8 = por %p135_p7, %p134_p6 }
  0x16   :  { %p137_p9 = pnand %p136_p8, %p130_p5 }
  0x8a   :  { %v35_v8 = vpop.permute.xlu0 %34 }
  0x8b   :  { %v48_v14 = vmul.f32 %v102_v3, %v35_v8  ;;  %v49_v15 = vmul.f32 %v45_v9, %v35_v8 }
  0x8e   :  { %v55_v13 = vpop.permute.xlu0 %54 }
  0x8f   :  { %v68_v16 = vmul.f32 %v103_v4, %v55_v13  ;;  %v69_v17 = vmul.f32 %v65_v10, %v55_v13 }
  0x91   :  { %v70_v19 = vadd.f32 %v68_v16, %v48_v14  ;;  %v71_v20 = vadd.f32 %v69_v17, %v49_v15 }
  0x93   :  { %v74_v21 = vcombine.low %v70_v19, %v71_v20 }
  0x95   :  { %v81_v22 = vrot.slane %v74_v21, %v80_v18 }
  0x97   :  { %86 = vst.msk [vmem:[#allocation5] sm:$0xf] %vm85_vm2, %v81_v22 }
  0x98   :  { %140 = shalt.err (!%p137_p9)
}
  0x99   :  { %96 = dma.vmem_to_hbm [thread:$0]  %s94_s1, 64, %s201_s4, [#allocation4]  }
  0x9a   :  { %151 = dma.done.wait [#allocation4], 64  }
  0x9b   :  { %152 = vsyncadd [#allocation4], 4294967232 }
  0x9c   :  { %100 = vsyncpa [#allocation3], 1 }
  0x9d   :  { %101 = vsyncpa [#allocation4], 1 }

</bundles_post_ra>
